<compile_context>
chip_gen: v7x
topology: tpu7x:2x2x1
jax: 0.10.0
libtpu: 0.0.40
codegen_flags: <defaults>
</compile_context>

<pallas_src>
import math

import jax
import jax.numpy as jnp
from jax import lax
from jax.experimental import pallas as pl
from jax.experimental.pallas import tpu as pltpu


# --------------------------------------------------------------------------------------
# Polyphase weights for a symmetric 3-tap resampling filter (e.g. [1, 2, 1]).
#
# upfirdn2d.upsample2d(x, f, up=2) == zero-insert by 2, pad (2, 0) per axis, 3x3 FIR with
# the normalized separable filter times gain 4.  Since 3 of every 4 samples of the
# zero-inserted tensor are zero, each output pixel depends on <= 4 input pixels:
#   out[2r  , 2c  ] = c_ee * (x[r-1,c-1] + x[r-1,c] + x[r,c-1] + x[r,c])
#   out[2r  , 2c+1] = c_eo * (x[r-1,c  ] + x[r,c  ])
#   out[2r+1, 2c  ] = c_eo * (x[r  ,c-1] + x[r,c  ])
#   out[2r+1, 2c+1] = c_oo *  x[r  ,c  ]
# with out-of-image neighbours treated as zero (matches upfirdn2d's zero padding).
# --------------------------------------------------------------------------------------
def _phase_weights(filt):
    f = [float(v) for v in filt]
    # TODO(synk): generalize to arbitrary-length / asymmetric resampling filters (needs a
    #             wider halo); R3GAN always uses [1, 2, 1].
    assert len(f) == 3 and f[0] == f[2], "polyphase path assumes a symmetric 3-tap filter"
    s = f[0] + f[1] + f[2]
    w_even = 2.0 * f[0] / s       # weight of each of the two pixels feeding an even phase
    w_odd = 2.0 * f[1] / s        # weight of the single pixel feeding an odd phase
    return w_even * w_even, w_even * w_odd, w_odd * w_odd


def _make_upsample_kernel(c_ee, c_eo, c_oo, with_conv, use_bf16):
    """Fused [optional 1x1 conv] + polyphase 2x upsample kernel body (NHWC, row-tiled)."""

    def epilogue(a, o_ref, carry_ref):
        # a: (TR, W, C) f32 conv output of this row tile
        TR, W, C = a.shape

        # Row above each row of the tile: carry (last conv row of previous tile, zeroed at
        # t == 0) followed by a[:-1].  Major-axis slicing / concat only -> no relayout.
        up = jnp.concatenate([carry_ref[...], a[:TR - 1]], axis=0)      # x[r-1, c]
        carry_ref[...] = a[TR - 1:TR]                                   # carry for tile t+1

        # Left neighbours via an XLU sublane roll + zeroed image-left border (column 0).
        col0 = lax.broadcasted_iota(jnp.int32, a.shape, 1) == 0
        vsum = up + a                                                   # x[r-1,c] + x[r,c]
        lsum = jnp.where(col0, 0.0, pltpu.roll(vsum, shift=1, axis=1))  # ul + lf
        lf = jnp.where(col0, 0.0, pltpu.roll(a, shift=1, axis=1))       # x[r, c-1]

        dt = o_ref.dtype
        # o_ref block: (TR, 2, W, 2C); (h, ph, w, pw*C + c) <-> output pixel (2h+ph, 2w+pw, c).
        # One full-width (2C lane) store per output phase row: [even-col | odd-col].
        o_ref[:, 0, :, :] = jnp.concatenate(
            [c_ee * (vsum + lsum), c_eo * vsum], axis=-1).astype(dt)
        o_ref[:, 1, :, :] = jnp.concatenate(
            [c_eo * (lf + a), c_oo * a], axis=-1).astype(dt)

    if with_conv:
        def kernel(x_ref, w_ref, o_ref, carry_ref):
            @pl.when(pl.program_id(1) == 0)
            def _():  # top of the image: the halo row above the first tile is zero
                carry_ref[...] = jnp.zeros_like(carry_ref)
            TR, W, Cin = x_ref.shape
            C = w_ref.shape[1]
            x = x_ref[...].reshape(TR * W, Cin)
            if use_bf16:
                x = x.astype(jnp.bfloat16)
            # 1x1 conv == channel matmul with f32 accumulation.
            a = jnp.dot(x, w_ref[...],
                        preferred_element_type=jnp.float32).reshape(TR, W, C)
            epilogue(a, o_ref, carry_ref)
    else:
        def kernel(x_ref, o_ref, carry_ref):
            @pl.when(pl.program_id(1) == 0)
            def _():
                carry_ref[...] = jnp.zeros_like(carry_ref)
            epilogue(x_ref[...].astype(jnp.float32), o_ref, carry_ref)

    return kernel


def _vmem_capacity_bytes():
    try:
        cap = getattr(pltpu.get_tpu_info(), "vmem_capacity_bytes", None)
        if cap:
            return int(cap)
    except Exception:
        pass
    return 64 << 20   # conservative fallback (v7x per-TensorCore VMEM)


def _pick_row_tile(H, W, Cin, Cout, budget_bytes):
    """Largest divisor of H fitting the budget; prefer TR*W a multiple of 256 (MXU M dim)."""
    # 2x-buffered f32 input (2*Cin) + 2x-buffered output (8*Cout) + in-kernel f32 temps.
    per_row = 4 * W * (2 * Cin + 12 * Cout)
    cap = max(1, min(H, budget_bytes // max(per_row, 1)))
    divs = [d for d in range(1, H + 1) if H % d == 0 and d <= cap]
    for align in (256, 128, 1):
        good = [d for d in divs if (d * W) % align == 0]
        if good:
            return max(good)
    return 1


def upsample_layer_nhwc(x, w2d=None, filt=(1, 2, 1), row_tile=None, out_dtype=None):
    """Fused UpsampleLayer on a channels-last activation.

    x:   (B, H, W, Cin) float32
    w2d: (Cin, Cout) weight of the optional 1x1 conv, or None (identity path, as in the
         PyTorch module when InputChannels == OutputChannels)
    returns: (B, 2H, 2W, Cout) in `out_dtype` (default: x.dtype; pass bf16 if the consumer
             accepts it — this kernel is HBM-bound and the output is the dominant stream).
    """
    B, H, W, Cin = x.shape
    with_conv = w2d is not None
    Cout = Cin if w2d is None else w2d.shape[1]
    out_dtype = x.dtype if out_dtype is None else out_dtype
    c_ee, c_eo, c_oo = _phase_weights(filt)
    # Small channel counts don't amortize the f32->bf16 cast + MXU push/drain; keep f32.
    use_bf16 = with_conv and min(Cin, Cout) >= 128

    vmem_cap = _vmem_capacity_bytes()
    if vmem_cap <= (64 << 20):          # v7x: 64 MiB per TensorCore
        budget, vmem_limit = 12 << 20, 40 << 20
    else:                               # v5e / v6e: 128 MiB
        budget, vmem_limit = 20 << 20, 80 << 20

    TR = row_tile if row_tile is not None else _pick_row_tile(H, W, Cin, Cout, budget)
    assert H % TR == 0, "row_tile must divide H"
    # TODO(synk): pad/mask the last row tile when H has no VMEM-friendly divisor, and add a
    #             W-tiling parallel axis on v7x when B == 1 (one TC is idle otherwise).
    grid = (B, H // TR)

    in_specs = [pl.BlockSpec((None, TR, W, Cin), lambda b, t: (b, t, 0, 0))]
    args = [x]
    if with_conv:
        in_specs.append(pl.BlockSpec((Cin, Cout), lambda b, t: (0, 0)))
        args.append(w2d.astype(jnp.bfloat16 if use_bf16 else jnp.float32))

    out5 = pl.pallas_call(
        _make_upsample_kernel(c_ee, c_eo, c_oo, with_conv, use_bf16),
        out_shape=jax.ShapeDtypeStruct((B, H, 2, W, 2 * Cout), out_dtype),
        grid=grid,
        in_specs=in_specs,
        out_specs=pl.BlockSpec((None, TR, 2, W, 2 * Cout),
                               lambda b, t: (b, t, 0, 0, 0)),
        # 1-row carry of the previous tile's conv output (replaces halo DMA + halo matmul).
        scratch_shapes=[pltpu.VMEM((1, W, Cout), jnp.float32)],
        compiler_params=pltpu.CompilerParams(
            # batch axis parallel (v7x 2-TC megacore); row axis carries the 1-row halo.
            dimension_semantics=("parallel", "arbitrary"),
            vmem_limit_bytes=vmem_limit,
        ),
    )(*args)

    # (B, H, 2, W, 2*Cout) -> (B, 2H, 2W, Cout): pure row-major metadata reshape, no copy.
    return out5.reshape(B, 2 * H, 2 * W, Cout)


def upsample_layer(x_nchw, weight=None, filt=(1, 2, 1), row_tile=None):
    """PyTorch-facing wrapper (NCHW in / NCHW out) matching UpsampleLayer.forward.

    weight: (Cout, Cin, 1, 1) 1x1-conv weight, or None when InputChannels == OutputChannels.
    """
    # TODO(synk): in a real model keep activations NHWC end-to-end; these boundary transposes
    #             (especially of the 4x larger output) can dominate this memory-bound kernel.
    B, Cin, H, W = x_nchw.shape
    x = jnp.transpose(x_nchw, (0, 2, 3, 1))                       # single NCHW -> NHWC
    w2d = None
    if weight is not None:
        Cout = weight.shape[0]
        w2d = weight.reshape(Cout, Cin).T                         # (Cin, Cout)
    y = upsample_layer_nhwc(x, w2d, filt=filt, row_tile=row_tile)
    return jnp.transpose(y, (0, 3, 1, 2))                         # single NHWC -> NCHW


# --------------------------------------------------------------------------------------
# Pure-jnp reference (for a correctness check in __main__): optional 1x1 conv followed by
# upfirdn2d-style zero-insert + separable lowpass with gain 4.
# --------------------------------------------------------------------------------------
def _reference_upsample_layer(x_nchw, weight, filt):
    B, Cin, H, W = x_nchw.shape
    if weight is not None:
        Cout = weight.shape[0]
        y = jnp.einsum("bchw,oc->bohw", x_nchw.astype(jnp.float32),
                       weight.reshape(Cout, Cin).astype(jnp.float32),
                       precision=lax.Precision.HIGHEST)
    else:
        Cout = Cin
        y = x_nchw.astype(jnp.float32)
    f = jnp.asarray(filt, jnp.float32)
    f = f / jnp.sum(f)
    f2 = jnp.outer(f, f) * 4.0                        # separable lowpass * gain (up**2)
    u = jnp.zeros((B, Cout, H, 2, W, 2), jnp.float32).at[:, :, :, 0, :, 0].set(y)
    u = u.reshape(B, Cout, 2 * H, 2 * W)
    up = jnp.pad(u, ((0, 0), (0, 0), (2, 0), (2, 0)))
    out = jnp.zeros((B, Cout, 2 * H, 2 * W), jnp.float32)
    for i in range(3):
        for j in range(3):
            out = out + f2[i, j] * up[:, :, i:i + 2 * H, j:j + 2 * W]
    return out


# --------------------------------------------------------------------------------------
if __name__ == "__main__":
    key = jax.random.PRNGKey(0)
    kx, kw, kx2 = jax.random.split(key, 3)

    # UpsampleLayer(InputChannels=32, OutputChannels=16, ResamplingFilter=[1, 2, 1])
    B, Cin, Cout, H, W = 2, 32, 16, 16, 16
    filt = (1, 2, 1)

    x = jax.random.normal(kx, (B, Cin, H, W), jnp.float32)
    # MSRInitializer(ActivationGain=1): N(0, 1/sqrt(FanIn)), FanIn = Cin * 1 * 1, no bias.
    w = (1.0 / math.sqrt(Cin)) * jax.random.normal(kw, (Cout, Cin, 1, 1), jnp.float32)

    # row_tile=4 forces 4 row tiles per image and exercises the cross-tile halo carry.
    out = jax.block_until_ready(upsample_layer(x, w, filt, row_tile=4))
    assert out.shape == (B, Cout, 2 * H, 2 * W) and out.dtype == jnp.float32
    assert bool(jnp.all(jnp.isfinite(out)))
    ref = _reference_upsample_layer(x, w, filt)
    # Tolerance covers possible reduced-precision (bf16-pass) matmul lowering differences
    # between the in-kernel dot and the XLA reference einsum; real bugs show up as O(1).
    assert bool(jnp.allclose(out, ref, atol=2e-2, rtol=2e-2)), \
        float(jnp.max(jnp.abs(out - ref)))

    # InputChannels == OutputChannels -> the module has no LinearLayer (resample only),
    # auto-picked row tile.
    x2 = jax.random.normal(kx2, (B, Cout, H, W), jnp.float32)
    out2 = jax.block_until_ready(upsample_layer(x2, None, filt))
    assert out2.shape == (B, Cout, 2 * H, 2 * W)
    ref2 = _reference_upsample_layer(x2, None, filt)
    assert bool(jnp.allclose(out2, ref2, atol=1e-5, rtol=1e-5)), \
        float(jnp.max(jnp.abs(out2 - ref2)))

    print("KERNEL_OK")
</pallas_src>

<mosaic_0001>
module attributes {stable_mosaic.version = 11 : i64} {
  func.func @kernel(%arg0: i32, %arg1: i32, %arg2: memref<1x4x16x32xf32, #tpu.memory_space<vmem>>, %arg3: memref<32x16xf32, #tpu.memory_space<vmem>>, %arg4: memref<1x4x2x16x32xf32, #tpu.memory_space<vmem>>, %arg5: memref<1x16x16xf32, #tpu.memory_space<vmem>>) attributes {dimension_semantics = [#tpu.dimension_semantics<parallel>, #tpu.dimension_semantics<arbitrary>], iteration_bounds = array<i64: 2, 4>, scalar_prefetch = 0 : i64, scratch_operands = 1 : i64, tpu.core_type = #tpu.core_type<tc>, window_params = [{transform_indices = @transform_0, window_bounds = array<i64: 1, 4, 16, 32>}, {pipeline_mode = #tpu.pipeline_mode<synchronous>, transform_indices = @transform_1, window_bounds = array<i64: 32, 16>}, {transform_indices = @transform_2, window_bounds = array<i64: 1, 4, 2, 16, 32>}]} {
    %c0_i32 = arith.constant 0 : i32
    %0 = arith.cmpi eq, %arg1, %c0_i32 : i32
    %1 = arith.extui %0 : i1 to i32
    %c0_i32_0 = arith.constant 0 : i32
    %2 = arith.cmpi ne, %1, %c0_i32_0 : i32
    scf.if %2 {
      %cst_29 = arith.constant 0.000000e+00 : f32
      %42 = vector.broadcast %cst_29 : f32 to vector<1x16x16xf32>
      %c0_30 = arith.constant 0 : index
      %c0_31 = arith.constant 0 : index
      %c0_32 = arith.constant 0 : index
      %43 = vector.load %arg5[%c0_30, %c0_31, %c0_32] : memref<1x16x16xf32, #tpu.memory_space<vmem>>, vector<1x16x16xf32>
      tpu.vector_store %arg5[%c0_30, %c0_31, %c0_32], %42 {strides = array<i32>} : memref<1x16x16xf32, #tpu.memory_space<vmem>>, vector<1x16x16xf32>,
    } else {
    }
    %c0 = arith.constant 0 : index
    %c0_1 = arith.constant 0 : index
    %c0_2 = arith.constant 0 : index
    %c0_3 = arith.constant 0 : index
    %3 = vector.load %arg2[%c0, %c0_1, %c0_2, %c0_3] : memref<1x4x16x32xf32, #tpu.memory_space<vmem>>, vector<1x4x16x32xf32>
    %4 = vector.shape_cast %3 : vector<1x4x16x32xf32> to vector<4x16x32xf32>
    %5 = vector.shape_cast %4 : vector<4x16x32xf32> to vector<64x32xf32>
    %c0_4 = arith.constant 0 : index
    %c0_5 = arith.constant 0 : index
    %6 = vector.load %arg3[%c0_4, %c0_5] : memref<32x16xf32, #tpu.memory_space<vmem>>, vector<32x16xf32>
    %cst = arith.constant dense<0.000000e+00> : vector<64x16xf32>
    %7 = tpu.matmul %5, %6, %cst {dimension_numbers = #tpu.dot_dimension_numbers<[1], [0], [0], [1], [0, 0, 1, 1], [], []>} : vector<64x32xf32>, vector<32x16xf32>, vector<64x16xf32> -> vector<64x16xf32>
    %8 = vector.shape_cast %7 : vector<64x16xf32> to vector<4x16x16xf32>
    %c0_6 = arith.constant 0 : index
    %c0_7 = arith.constant 0 : index
    %c0_8 = arith.constant 0 : index
    %9 = vector.load %arg5[%c0_6, %c0_7, %c0_8] : memref<1x16x16xf32, #tpu.memory_space<vmem>>, vector<1x16x16xf32>
    %10 = vector.extract_strided_slice %8 {offsets = [0, 0, 0], sizes = [3, 16, 16], strides = [1, 1, 1]} : vector<4x16x16xf32> to vector<3x16x16xf32>
    %11 = tpu.concatenate %9, %10 in 0 : vector<1x16x16xf32>, vector<3x16x16xf32> -> vector<4x16x16xf32>
    %12 = vector.extract_strided_slice %8 {offsets = [3, 0, 0], sizes = [1, 16, 16], strides = [1, 1, 1]} : vector<4x16x16xf32> to vector<1x16x16xf32>
    %c0_9 = arith.constant 0 : index
    %c0_10 = arith.constant 0 : index
    %c0_11 = arith.constant 0 : index
    %13 = vector.load %arg5[%c0_9, %c0_10, %c0_11] : memref<1x16x16xf32, #tpu.memory_space<vmem>>, vector<1x16x16xf32>
    tpu.vector_store %arg5[%c0_9, %c0_10, %c0_11], %12 {strides = array<i32>} : memref<1x16x16xf32, #tpu.memory_space<vmem>>, vector<1x16x16xf32>,
    %14 = tpu.iota {dimensions = array<i32: 1>} : vector<4x16x16xi32>
    %c0_i32_12 = arith.constant 0 : i32
    %15 = vector.broadcast %c0_i32_12 : i32 to vector<4x16x16xi32>
    %16 = arith.cmpi eq, %14, %15 : vector<4x16x16xi32>
    %17 = arith.addf %11, %8 : vector<4x16x16xf32>
    %c1_i32 = arith.constant 1 : i32
    %18 = tpu.dynamic_rotate %17 by %c1_i32 dim 1 : vector<4x16x16xf32>, i32 -> vector<4x16x16xf32>
    %cst_13 = arith.constant 0.000000e+00 : f32
    %19 = vector.broadcast %cst_13 : f32 to vector<4x16x16xf32>
    %20 = arith.select %16, %19, %18 : vector<4x16x16xi1>, vector<4x16x16xf32>
    %c1_i32_14 = arith.constant 1 : i32
    %21 = tpu.dynamic_rotate %8 by %c1_i32_14 dim 1 : vector<4x16x16xf32>, i32 -> vector<4x16x16xf32>
    %cst_15 = arith.constant 0.000000e+00 : f32
    %22 = vector.broadcast %cst_15 : f32 to vector<4x16x16xf32>
    %23 = arith.select %16, %22, %21 : vector<4x16x16xi1>, vector<4x16x16xf32>
    %24 = arith.addf %17, %20 : vector<4x16x16xf32>
    %cst_16 = arith.constant 2.500000e-01 : f32
    %25 = vector.broadcast %cst_16 : f32 to vector<4x16x16xf32>
    %26 = arith.mulf %25, %24 : vector<4x16x16xf32>
    %cst_17 = arith.constant 5.000000e-01 : f32
    %27 = vector.broadcast %cst_17 : f32 to vector<4x16x16xf32>
    %28 = arith.mulf %27, %17 : vector<4x16x16xf32>
    %29 = tpu.concatenate %26, %28 in 2 : vector<4x16x16xf32>, vector<4x16x16xf32> -> vector<4x16x32xf32>
    %c0_18 = arith.constant 0 : index
    %c0_19 = arith.constant 0 : index
    %c0_20 = arith.constant 0 : index
    %c0_21 = arith.constant 0 : index
    %c0_22 = arith.constant 0 : index
    %30 = vector.load %arg4[%c0_18, %c0_19, %c0_20, %c0_21, %c0_22] : memref<1x4x2x16x32xf32, #tpu.memory_space<vmem>>, vector<1x4x1x16x32xf32>
    %31 = vector.shape_cast %30 : vector<1x4x1x16x32xf32> to vector<4x16x32xf32>
    %32 = vector.shape_cast %29 : vector<4x16x32xf32> to vector<1x4x1x16x32xf32>
    tpu.vector_store %arg4[%c0_18, %c0_19, %c0_20, %c0_21, %c0_22], %32 {strides = array<i32>} : memref<1x4x2x16x32xf32, #tpu.memory_space<vmem>>, vector<1x4x1x16x32xf32>,
    %33 = arith.addf %23, %8 : vector<4x16x16xf32>
    %cst_23 = arith.constant 5.000000e-01 : f32
    %34 = vector.broadcast %cst_23 : f32 to vector<4x16x16xf32>
    %35 = arith.mulf %34, %33 : vector<4x16x16xf32>
    %cst_24 = arith.constant 1.000000e+00 : f32
    %36 = vector.broadcast %cst_24 : f32 to vector<4x16x16xf32>
    %37 = arith.mulf %36, %8 : vector<4x16x16xf32>
    %38 = tpu.concatenate %35, %37 in 2 : vector<4x16x16xf32>, vector<4x16x16xf32> -> vector<4x16x32xf32>
    %c0_25 = arith.constant 0 : index
    %c0_26 = arith.constant 0 : index
    %c1 = arith.constant 1 : index
    %c0_27 = arith.constant 0 : index
    %c0_28 = arith.constant 0 : index
    %39 = vector.load %arg4[%c0_25, %c0_26, %c1, %c0_27, %c0_28] : memref<1x4x2x16x32xf32, #tpu.memory_space<vmem>>, vector<1x4x1x16x32xf32>
    %40 = vector.shape_cast %39 : vector<1x4x1x16x32xf32> to vector<4x16x32xf32>
    %41 = vector.shape_cast %38 : vector<4x16x32xf32> to vector<1x4x1x16x32xf32>
    tpu.vector_store %arg4[%c0_25, %c0_26, %c1, %c0_27, %c0_28], %41 {strides = array<i32>} : memref<1x4x2x16x32xf32, #tpu.memory_space<vmem>>, vector<1x4x1x16x32xf32>,
    return
  }
  func.func @transform_0(%arg0: i32, %arg1: i32) -> (i32, i32, i32, i32) {
    %c0_i32 = arith.constant 0 : i32
    %c0_i32_0 = arith.constant 0 : i32
    %c0_i32_1 = arith.constant 0 : i32
    return %arg0, %arg1, %c0_i32, %c0_i32_0 : i32, i32, i32, i32
  }
  func.func @transform_1(%arg0: i32, %arg1: i32) -> (i32, i32) {
    %c0_i32 = arith.constant 0 : i32
    %c0_i32_0 = arith.constant 0 : i32
    %c0_i32_1 = arith.constant 0 : i32
    return %c0_i32, %c0_i32_0 : i32, i32
  }
  func.func @transform_2(%arg0: i32, %arg1: i32) -> (i32, i32, i32, i32, i32) {
    %c0_i32 = arith.constant 0 : i32
    %c0_i32_0 = arith.constant 0 : i32
    %c0_i32_1 = arith.constant 0 : i32
    %c0_i32_2 = arith.constant 0 : i32
    return %arg0, %arg1, %c0_i32, %c0_i32_0, %c0_i32_1 : i32, i32, i32, i32, i32
  }
}

</mosaic_0001>

<bundles_post_ra>
// kernel: tpu_custom_call.1
= control target key start
LH: loop header
LB: loop body
LE: loop exit
PB: predicated region body
PF: predicated region fallthrough
CT: control target
= control target key end

     0   :  { %7 = vsyncpa [#allocation4], 0  ;;  %s1350_s0 = inlined_call_operand.hbm [shape: f32[2,16,16,32], index: 0, kind: input, shape index: {}]   ;;  %s1351_s1 = inlined_call_operand.vmem [shape: f32[32,16], index: 1, kind: input, shape index: {}]   ;;  %s1352_s2 = inlined_call_operand.hbm [shape: f32[2,16,2,16,32], index: 2, kind: output, shape index: {}]  }
   0x1   :  { %9 = vsyncpa [#allocation4 + $0x1], 0 }
   0x2   :  { %10 = vsyncpa [#allocation5], 0 }
   0x3   :  { %12 = vsyncpa [#allocation5 + $0x1], 0  ;;  %s962_s9 = smov 0   ;;  %s964_s10 = smov 0  }
   0x4   :  { %s966_s11 = smov 0   ;;  %s968_s12 = smov 0  }
   0x5   :  { %s970_s13 = smov 0   ;;  %s972_s14 = smov 0  }
   0x6   :  { %s974_s15 = smov 0   ;;  %s976_s16 = smov 0  }
   0x7 LB: > { %s643_s17 = sadd.s32 4294967295, %s937_s16   ;;  %s644_s18 = sadd.s32 4294967294, %s937_s16   ;;  %s937_s16 = sphi %s976_s16, %s18_s16   ;;  %s933_s15 = sphi %s974_s15, %s1367_s15   ;;  %s929_s14 = sphi %s972_s14, %s1366_s14   ;;  %s925_s13 = sphi %s970_s13, %s1365_s13   ;;  %s921_s12 = sphi %s968_s12, %s1364_s12   ;;  %s917_s11 = sphi %s966_s11, %s1363_s11   ;;  %s913_s10 = sphi %s964_s10, %s1362_s10   ;;  %s909_s9 = sphi %s962_s9, %s1361_s9  }
   0x8   : > { %s27_s19 = sadd.s32 1, %s929_s14  ;;  %s30_s20 = sadd.s32 1, %s933_s15 }
   0x9   : > { %p28_p0 = scmp.ge.s32.totalorder %s27_s19, 4  ;;  %s39_s21 = sadd.s32 1, %s917_s11 }
   0xa   : > { %p46_p1 = scmp.ne.s32.totalorder %s917_s11, %s913_s10  ;;  %p47_p2 = scmp.eq.s32.totalorder %s937_s16, 0 }
   0xb   : > { %s1369_s19 = smov (%p28_p0, %s27_s19), 0  ;;  %s1371_s20 = smov (!%p28_p0, %s30_s20), %s933_s15 }
   0xc   : > { %s35_s22 = ssub.s32 %s929_s14, %s1369_s19  ;;  %p1015_p3 = por %p47_p2, %p46_p1 }
   0xd   : > { %p32_p4 = scmp.ge.s32.totalorder %s1371_s20, 2  ;;  %p52_p5 = scmp.ne.s32.totalorder %s913_s10, %s909_s9 }
   0xe   : > { %p53_p6 = scmp.eq.s32.totalorder %s643_s17, 0  ;;  %p99_p7 = scmp.eq.s32.totalorder %s643_s17, 7 }
   0xf   : > { %s1373_s20 = smov (%p32_p4, %s1371_s20), 0  ;;  %p105_p10 = scmp.eq.s32.totalorder %s644_s18, 7 }
  0x10   : > { %p1023_p8 = por %p53_p6, %p52_p5  ;;  %p1027_p9 = por %p99_p7, %p46_p1 }
  0x11   : > { %s34_s26 = ssub.s32 %s933_s15, %s1373_s20  ;;  %p1033_p12 = por %p105_p10, %p52_p5 }
  0x12   : > { %s1356_s25 = scalar_select %p1027_p9, 1, 0 }
  0x13   : > { %s36_s27 = sor.u32 %s35_s22, %s34_s26  ;;  %p737_p13 = scmp.lt.s32.totalorder %s937_s16, 8 }
  0x14   : > { %p37_p11 = scmp.eq.s32.totalorder %s36_s27, 0  ;;  %s128_s29 = sand.u32 1, %s917_s11  }
  0x15   : > { %s1357_s28 = scalar_select %p1033_p12, 1, 0 }
  0x16   : > { %s1040_s30 = scalar_select %p37_p11, %s917_s11, %s39_s21  }
  0x17   : > { %s647_s3 = sshll.u32 %s128_s29, 6  ;;  %s679_s4 = sshll.u32 %s929_s14, 3 }
  0x18   : > { %s650_s5 = sshll.u32 %s933_s15, 5  ;;  %s132_s6 = scalar_lea.vmem [#allocation3], %s647_s3 }
  0x19   : > { %s142_s7 = sshll.u32 %s132_s6, 4  ;;  %s139_s8 = sadd.s32 %s679_s4, %s650_s5  ;;  %s1044_s7 = int_to_ptr.vmem [resolvable:$true] %s142_s7 }
  0x1a   : > { %s651_s17 = sshll.u32 %s139_s8, 7  ;;  %p1048_p0 = pnand %p737_p13, %p1015_p3 }
  0x1b   : > { %s1055_s21 = scalar_lea.hbm %s1350_s0, %s651_s17  ;;  %s1057_s27 = scalar_lea.sflag [#allocation4], %s128_s29 }
  0x1c   : > { %s809_s3 = scalar_lea.hbm %s1055_s21, 1024  ;;  %p811_p2 = pneg %p1048_p0 }
  0x1d   : > { %p810_p1 = scmp.ne.s32.totalorder %s1055_s21, %s809_s3  ;;  %s814_s5 = scalar_lea.hbm %s1350_s0, 8192 }
  0x1e   : > { %p815_p5 = scmp.lt.u32.totalorder %s1055_s21, %s1350_s0  ;;  %p816_p6 = scmp.lt.u32.totalorder %s814_s5, %s809_s3 }
  0x1f   : > { %p812_p3 = pnand %p811_p2, %p810_p1  ;;  %p818_p10 = scmp.lt.u32.totalorder %s809_s3, %s1055_s21 }
  0x20   : > { %p817_p7 = por %p816_p6, %p815_p5 }
  0x21   : > { %p813_p4 = pneg %p812_p3 }
  0x22   : > { %p819_p11 = por %p818_p10, %p817_p7 }
  0x24   : > { %p820_p13 = pnand %p819_p11, %p813_p4 }
  0x26   : > { %823 = shalt.err (!%p820_p13)
}
  0x27   : > { %s824_s29 = scalar_lea.vmem %s1044_s7, 1024  ;;  %s939_s17 = smov [#allocation3]  }
  0x28   : > { %p825_p1 = scmp.ne.s32.totalorder %s1044_s7, %s824_s29  ;;  %s829_s22 = sshll.u32 %s939_s17, 4  ;;  %s830_s22 = int_to_ptr.vmem [resolvable:$false] %s829_s22 }
  0x29   : > { %s831_s26 = scalar_lea.vmem %s830_s22, 2048  ;;  %p832_p9 = scmp.lt.s32.totalorder %s1044_s7, %s830_s22 }
  0x2a   : > { %p827_p3 = pnand %p825_p1, %p811_p2  ;;  %p833_p5 = scmp.lt.s32.totalorder %s831_s26, %s824_s29 }
  0x2c   : > { %p828_p12 = pneg %p827_p3  ;;  %p834_p6 = por %p833_p5, %p832_p9 }
  0x2e   : > { %p835_p7 = pnand %p834_p6, %p828_p12 }
  0x30   : > { %838 = shalt.err (!%p835_p7)
}
  0x31   : > { %s940_s3 = smov 128   ;;  %s941_s23 = smov 8  }
  0x32   : > { %732 = dma.hbm_to_vmem [thread:$0]  (!%p1048_p0), %s1055_s21, 1024, %s1044_s7, %s1057_s27, %s940_s3, %s940_s3, %s941_s23  }
  0x33   : > { %p652_p2 = scmp.ge.s32.totalorder %s937_s16, 1  ;;  %p150_p4 = scmp.lt.s32.totalorder %s937_s16, 9 }
  0x35   : > { %p151_p10 = pnand %p652_p2, %p150_p4 }
  0x36   : > { %s1088_s4 = sand.u32 (!%p151_p10), 1, %s913_s10  }
  0x37   : > { %154 = sbr.rel (%p151_p10) target bundleno = 455 (0x1c7), region = 28  ;;  %s653_s5 = sshll.u32 (!%p151_p10), %s1088_s4, 6 }
  0x38   : > { %s157_s6 = scalar_lea.sflag (!%p151_p10), [#allocation4], %s1088_s4  ;;  %s1092_s8 = scalar_lea.vmem (!%p151_p10), [#allocation3], %s653_s5 }
  0x3e   : > { %900 = dma.done.wait (%p1023_p8), %s157_s6, 1024  }
  0x3f   : > { %902 = vsyncadd (%p1023_p8), %s157_s6, 4294966272  ;;  %s654_s7 = sshll.u32 %s1088_s4, 7  ;;  %p655_p9 = scmp.ne.s32.totalorder %s921_s12, 0 }
  0x40   : > { %s1099_s18 = scalar_lea.vmem [#allocation6], %s654_s7  ;;  %vm187_vm0 = vcmask (!%p655_p9), 130048   ;;  %v942_v0 = vmov (!%p655_p9), 0.0  }
  0x41   : > { %186 = sbr.rel (%p655_p9) target bundleno = 72 (0x48), region = 36  ;;  %188 = vst.msk [vmem:[#allocation2] sm:$0xff] (!%p655_p9), %vm187_vm0, %v942_v0  ;;  %189 = vst.msk [vmem:[#allocation2 + $0x8] sm:$0xff] (!%p655_p9), %vm187_vm0, %v942_v0 }
  0x48 PF: > { %v198_v1 = vld [vmem:[%s1351_s1] sm:$0xff]  ;;  %v199_v2 = vld [vmem:[%s1351_s1 + $0x8] sm:$0xff]  ;;  %v200_v3 = vld [vmem:[%s1351_s1 + $0x10] sm:$0xff]  ;;  %vm202_vm1 = vcmask 261120   ;;  %v337_v15 = vlaneseq  ;;  %s943_s23 = smov 16   ;;  %vm334_vm3 = vcmask 130048  }
  0x49   : > { %v713_v4 = vpack.c.bf16 %v199_v2, %v198_v1  ;;  %v201_v5 = vld [vmem:[%s1351_s1 + $0x18] sm:$0xff]  ;;  %v190_v6 = vld [vmem:[%s1092_s8] sm:$0xff]  ;;  %v192_v11 = vld [vmem:[%s1092_s8 + $0x10] sm:$0xff]  ;;  %s680_s5 = sshll.u32 %s921_s12, 4  ;;  %s675_s6 = sshll.u32 %s925_s13, 6 }
  0x4a   : > { %v194_v7 = vld [vmem:[%s1092_s8 + $0x20] sm:$0xff]  ;;  %v717_v8 = vpack.c.bf16 %v201_v5, %v200_v3  ;;  %701 = vmatprep.mubr.msk.f32.mxu0 %vm202_vm1, %v190_v6  ;;  %v191_v9 = vld [vmem:[%s1092_s8 + $0x8] sm:$0xff]  ;;  %v196_v12 = vld [vmem:[%s1092_s8 + $0x30] sm:$0xff]  ;;  %v1130_v16 = vshrl.u32 %v337_v15, 7  ;;  %s553_s12 = sshll.u32 %s1099_s18, 4  ;;  %s537_s24 = scalar_lea.sflag [#allocation5], %s1088_s4  ;;  %s1285_s12 = int_to_ptr.vmem [resolvable:$true] %s553_s12 }
  0x4b   : > { %707 = vmatprep.mubr.msk.f32.mxu1 %vm202_vm1, %v194_v7  ;;  %714 = vmatprep.subr.bf16.mxu0 %v713_v4  ;;  %v195_v10 = vld [vmem:[%s1092_s8 + $0x28] sm:$0xff]  ;;  %v193_v13 = vld [vmem:[%s1092_s8 + $0x18] sm:$0xff]  ;;  %v332_v24 = vld [vmem:[#allocation2] sm:$0xff]  ;;  %s839_s29 = scalar_lea.vmem %s1285_s12, 2048  ;;  %p1359_p12 = scmp.ne.s32.totalorder %s1356_s25, 0 }
  0x4c   : > { %721 = vmatprep.subr.bf16.mxu1 %v713_v4  ;;  %716 = vmatpush3.bf16.msra.mxu0 %v713_v4  ;;  %v197_v14 = vld [vmem:[%s1092_s8 + $0x38] sm:$0xff]  ;;  %vm358_vm2 = vcmp.lt.s32.totalorder %v1130_v16, 1  ;;  %vm340_vm4 = vcmp.eq.s32.totalorder %v1130_v16, 0  ;;  %s550_s8 = sadd.s32 %s680_s5, %s675_s6  ;;  %p840_p8 = scmp.ne.s32.totalorder %s1285_s12, %s839_s29 }
  0x4d   : > { %723 = vmatpush3.bf16.msra.mxu1 %v713_v4  ;;  %718 = vmatprep.subr.bf16.mxu0 %v717_v8  ;;  %v333_v19 = vld [vmem:[#allocation2 + $0x8] sm:$0xff]  ;;  %s676_s13 = sshll.u32 %s550_s8, 7  ;;  %s944_s17 = smov [#allocation6]  }
  0x4e   : > { %722 = vmatprep.subr.bf16.mxu1 %v717_v8  ;;  %s1291_s27 = scalar_lea.hbm %s1352_s2, %s676_s13  ;;  %p841_p0 = pnand %p840_p8, %p1359_p12 }
  0x4f   : > { %s843_s22 = sshll.u32 %s944_s17, 4  ;;  %s844_s22 = int_to_ptr.vmem [resolvable:$false] %s843_s22 }
  0x50   : > { %720 = vmatpush3.bf16.msra.mxu0 %v717_v8  ;;  %p842_p11 = pneg %p841_p0  ;;  %s845_s26 = scalar_lea.vmem %s844_s22, 4096 }
  0x51   : > { %724 = vmatpush3.bf16.msra.mxu1 %v717_v8  ;;  %p846_p13 = scmp.lt.s32.totalorder %s1285_s12, %s844_s22  ;;  %p847_p1 = scmp.lt.s32.totalorder %s845_s26, %s839_s29 }
  0x53   : > { %702 = vmatmul.mubr.msk.f32.vlgmr.msra.gmra.mrb[0].mxu0 %vm202_vm1, %v191_v9  ;;  %p848_p3 = por %p847_p1, %p846_p13 }
  0x54   : > { %708 = vmatmul.mubr.msk.f32.vlgmr.msra.gmra.mrb[0].mxu1 %vm202_vm1, %v195_v10  ;;  %704 = vmatprep.mubr.msk.f32.mxu0 %vm202_vm1, %v192_v11 }
  0x55   : > { %710 = vmatprep.mubr.msk.f32.mxu1 %vm202_vm1, %v196_v12  ;;  %p849_p5 = pnand %p848_p3, %p842_p11 }
  0x57   : > { %705 = vmatmul.mubr.msk.f32.gmra.mrb[2].mxu0 %vm202_vm1, %v193_v13 }
  0x58   : > { %711 = vmatmul.mubr.msk.f32.gmra.mrb[2].mxu1 %vm202_vm1, %v197_v14 }
 0x126   : > { %v703_v17 = vpop.f32.mrb[0].mxu0 }
 0x127   : > { %v709_v18 = vpop.f32.mrb[0].mxu1  ;;  %v379_v20 = vrot.slane %v703_v17, 7  ;;  %497 = vrot.lane.b32.xlu1 %v703_v17, %s943_s23  ;;  %v293_v23 = vpop.f32.mrb[1].mxu0  ;;  %v343_v27 = vadd.f32 %v703_v17, %v333_v19 }
 0x128   : > { %v381_v21 = vrot.slane %v709_v18, 7  ;;  %v313_v22 = vpop.f32.mrb[1].mxu1  ;;  %v375_v26 = vrot.slane %v293_v23, 7  ;;  %495 = vrot.lane.b32.xlu0 %v293_v23, %s943_s23  ;;  %v342_v30 = vadd.f32 %v332_v24, %v293_v23 }
 0x129   : > { %v377_v25 = vrot.slane %v313_v22, 7  ;;  %v416_v47 = vmul.f32 0.5, %v343_v27  ;;  %v354_v51 = vrot.slane %v343_v27, 7 }
 0x12a   : > { %v706_v28 = vpop.f32.mrb[2].mxu0  ;;  %v383_v31 = vsel %vm358_vm2, %v375_v26, %v379_v20  ;;  %v387_v32 = vsel %vm358_vm2, %v379_v20, %v375_v26  ;;  %v415_v50 = vmul.f32 0.5, %v342_v30  ;;  %v350_v63 = vrot.slane %v342_v30, 7 }
 0x12b   : > { %v1135_v29 = vpop.f32.mrb[2].mxu1  ;;  %v385_v33 = vsel %vm358_vm2, %v377_v25, %v381_v21  ;;  %v380_v34 = vrot.slane %v706_v28, 7  ;;  %505 = vrot.lane.b32.xlu1 %v709_v18, %s943_s23  ;;  %v303_v37 = vpop.f32.mrb[3].mxu0  ;;  %v345_v38 = vadd.f32 %v706_v28, %v703_v17  ;;  %v347_v39 = vadd.f32 %v709_v18, %v706_v28 }
 0x12c   : > { %336 = vst.msk [vmem:[#allocation2 + $0x8] sm:$0xff] %vm334_vm3, %v1135_v29  ;;  %v382_v35 = vrot.slane %v1135_v29, 7  ;;  %v1146_v36 = vpop.f32.mrb[3].mxu1  ;;  %v1155_v42 = vadd.f32 %v303_v37, %v293_v23  ;;  %v346_v43 = vadd.f32 %v313_v22, %v303_v37  ;;  %503 = vrot.lane.b32.xlu0 %v313_v22, %s943_s23  ;;  %v376_v44 = vrot.slane %v303_v37, 7 }
 0x12d   : > { %335 = vst.msk [vmem:[#allocation2] sm:$0xff] %vm334_vm3, %v1146_v36  ;;  %v1152_v40 = vadd.f32 %v1146_v36, %v313_v22  ;;  %v378_v41 = vrot.slane %v1146_v36, 7  ;;  %v349_v45 = vadd.f32 %v1135_v29, %v709_v18  ;;  %v418_v55 = vmul.f32 0.5, %v345_v38 }
 0x12e   : > { %v388_v49 = vsel %vm358_vm2, %v380_v34, %v376_v44  ;;  %v351_v53 = vrot.slane %v1155_v42, 7  ;;  %v472_v57 = vadd.f32 %v703_v17, %v383_v31  ;;  %v391_v58 = vsel %vm340_vm4, 0.0, %v387_v32 }
 0x12f   : > { %v390_v46 = vsel %vm358_vm2, %v382_v35, %v378_v41  ;;  %501 = vrot.lane.b32.xlu1 %v706_v28, %s943_s23  ;;  %v393_v54 = vsel %vm340_vm4, 0.0, %v388_v49  ;;  %v476_v59 = vadd.f32 %v709_v18, %v385_v33  ;;  %v471_v60 = vadd.f32 %v391_v58, %v293_v23 }
 0x130   : > { %v397_v48 = vsel %vm340_vm4, 0.0, %v390_v46  ;;  %433 = vrot.lane.b32.xlu0 %v416_v47, %s943_s23  ;;  %v1176_v56 = vadd.f32 %v393_v54, %v303_v37  ;;  %v389_v61 = vsel %vm358_vm2, %v381_v21, %v377_v25  ;;  %v384_v62 = vsel %vm358_vm2, %v376_v44, %v380_v34 }
 0x131   : > { %v1170_v52 = vadd.f32 %v397_v48, %v1146_v36  ;;  %v352_v0 = vrot.slane %v346_v43, 7  ;;  %v395_v1 = vsel %vm340_vm4, 0.0, %v389_v61  ;;  %v474_v2 = vadd.f32 %v706_v28, %v384_v62 }
 0x132   : > { %v475_v3 = vadd.f32 %v395_v1, %v313_v22  ;;  %v359_v4 = vsel %vm358_vm2, %v350_v63, %v354_v51  ;;  %v355_v5 = vrot.slane %v345_v38, 7  ;;  %v420_v6 = vmul.f32 0.5, %v347_v39 }
 0x133   : > { %437 = vrot.lane.b32.xlu1 %v418_v55, %s943_s23  ;;  %v400_v7 = vadd.f32 %v359_v4, %v343_v27  ;;  %v363_v8 = vsel %vm358_vm2, %v354_v51, %v350_v63  ;;  %v356_v9 = vrot.slane %v347_v39, 7  ;;  %v353_v10 = vrot.slane %v1152_v40, 7 }
 0x134   : > { %431 = vrot.lane.b32.xlu0 %v415_v50, %s943_s23  ;;  %v360_v11 = vsel %vm358_vm2, %v351_v53, %v355_v5  ;;  %v367_v12 = vsel %vm340_vm4, 0.0, %v363_v8  ;;  %v357_v18 = vrot.slane %v349_v45, 7  ;;  %v364_v20 = vsel %vm358_vm2, %v355_v5, %v351_v53 }
 0x135   : > { %v402_v13 = vadd.f32 %v360_v11, %v345_v38  ;;  %v399_v14 = vadd.f32 %v367_v12, %v342_v30  ;;  %v361_v15 = vsel %vm358_vm2, %v352_v0, %v356_v9  ;;  %v365_v19 = vsel %vm358_vm2, %v356_v9, %v352_v0 }
 0x136   : > { %v404_v17 = vadd.f32 %v361_v15, %v347_v39  ;;  %v422_v21 = vmul.f32 0.5, %v349_v45  ;;  %v371_v22 = vsel %vm340_vm4, 0.0, %v365_v19  ;;  %v369_v23 = vsel %vm340_vm4, 0.0, %v364_v20 }
 0x137   : > { %441 = vrot.lane.b32.xlu1 %v420_v6, %s943_s23  ;;  %v419_v24 = vmul.f32 0.5, %v346_v43  ;;  %v362_v25 = vsel %vm358_vm2, %v353_v10, %v357_v18  ;;  %v403_v26 = vadd.f32 %v371_v22, %v346_v43  ;;  %v1212_v27 = vadd.f32 %v369_v23, %v1155_v42 }
 0x138   : > { %499 = vrot.lane.b32.xlu0 %v303_v37, %s943_s23  ;;  %v406_v28 = vadd.f32 %v362_v25, %v349_v45  ;;  %v366_v30 = vsel %vm358_vm2, %v357_v18, %v353_v10  ;;  %v386_v31 = vsel %vm358_vm2, %v378_v41, %v382_v35  ;;  %v417_v34 = vmul.f32 0.5, %v1155_v42 }
 0x139   : > { %v373_v32 = vsel %vm340_vm4, 0.0, %v366_v30  ;;  %v1225_v33 = vadd.f32 %v1135_v29, %v386_v31  ;;  %v421_v38 = vmul.f32 0.5, %v1152_v40  ;;  %v480_v16 = vmul.f32 0.5, %v472_v57 }
 0x13a   : > { %v405_v37 = vadd.f32 %v373_v32, %v1152_v40  ;;  %v479_v39 = vmul.f32 0.5, %v471_v60  ;;  %v484_v43 = vmul.f32 0.5, %v476_v59  ;;  %v483_v44 = vmul.f32 0.5, %v475_v3 }
 0x13b   : > { %445 = vrot.lane.b32.xlu1 %v422_v21, %s943_s23  ;;  %v482_v47 = vmul.f32 0.5, %v474_v2  ;;  %v408_v49 = vmul.f32 0.25, %v400_v7  ;;  %v410_v54 = vmul.f32 0.25, %v402_v13  ;;  %v407_v57 = vmul.f32 0.25, %v399_v14 }
 0x13c   : > { %439 = vrot.lane.b32.xlu0 %v419_v24, %s943_s23  ;;  %v412_v61 = vmul.f32 0.25, %v404_v17  ;;  %v481_v63 = vmul.f32 0.5, %v1176_v56  ;;  %v414_v3 = vmul.f32 0.25, %v406_v28  ;;  %v411_v5 = vmul.f32 0.25, %v403_v26 }
 0x13d   : > { %v409_v8 = vmul.f32 0.25, %v1212_v27  ;;  %v413_v10 = vmul.f32 0.25, %v405_v37  ;;  %v486_v14 = vmul.f32 0.5, %v1225_v33  ;;  %v485_v17 = vmul.f32 0.5, %v1170_v52 }
 0x13f   : > { %435 = vrot.lane.b32.xlu1 %v417_v34, %s943_s23 }
 0x140   : > { %443 = vrot.lane.b32.xlu0 %v421_v38, %s943_s23 }
 0x143   : > { %509 = vrot.lane.b32.xlu1 %v1135_v29, %s943_s23 }
 0x144   : > { %507 = vrot.lane.b32.xlu0 %v1146_v36, %s943_s23 }
 0x199   : > { %v498_v35 = vpop.permute.xlu1 %497 }
 0x19a   : > { %v520_v41 = vsel %vm334_vm3, %v480_v16, %v498_v35  ;;  %v496_v42 = vpop.permute.xlu0 %495 }
 0x19b   : > { %665 = vst.msk [vmem:[%s1099_s18 + $0x18] sm:$0xff] %vm202_vm1, %v520_v41  ;;  %v519_v40 = vsel %vm334_vm3, %v479_v39, %v496_v42 }
 0x19c   : > { %664 = vst.msk [vmem:[%s1099_s18 + $0x10] sm:$0xff] %vm202_vm1, %v519_v40 }
 0x19d   : > { %v506_v29 = vpop.permute.xlu1 %505 }
 0x19e   : > { %v524_v36 = vsel %vm334_vm3, %v484_v43, %v506_v29  ;;  %v504_v45 = vpop.permute.xlu0 %503 }
 0x19f   : > { %669 = vst.msk [vmem:[%s1099_s18 + $0x58] sm:$0xff] %vm202_vm1, %v524_v36  ;;  %v523_v46 = vsel %vm334_vm3, %v483_v44, %v504_v45 }
 0x1a0   : > { %668 = vst.msk [vmem:[%s1099_s18 + $0x50] sm:$0xff] %vm202_vm1, %v523_v46 }
 0x1a1   : > { %v502_v48 = vpop.permute.xlu1 %501 }
 0x1a2   : > { %v522_v50 = vsel %vm334_vm3, %v482_v47, %v502_v48  ;;  %v434_v51 = vpop.permute.xlu0 %433 }
 0x1a3   : > { %667 = vst.msk [vmem:[%s1099_s18 + $0x38] sm:$0xff] %vm202_vm1, %v522_v50  ;;  %v456_v53 = vsel %vm334_vm3, %v408_v49, %v434_v51 }
 0x1a4   : > { %464 = vst.msk [vmem:[%s1099_s18 + $0x8] sm:$0xff] %vm202_vm1, %v456_v53 }
 0x1a5   : > { %v438_v55 = vpop.permute.xlu1 %437 }
 0x1a6   : > { %v458_v58 = vsel %vm334_vm3, %v410_v54, %v438_v55  ;;  %v432_v59 = vpop.permute.xlu0 %431 }
 0x1a7   : > { %466 = vst.msk [vmem:[%s1099_s18 + $0x28] sm:$0xff] %vm202_vm1, %v458_v58  ;;  %v455_v60 = vsel %vm334_vm3, %v407_v57, %v432_v59 }
 0x1a8   : > { %463 = vst.msk [vmem:[%s1099_s18] sm:$0xff] %vm202_vm1, %v455_v60 }
 0x1a9   : > { %v442_v62 = vpop.permute.xlu1 %441 }
 0x1aa   : > { %v460_v0 = vsel %vm334_vm3, %v412_v61, %v442_v62  ;;  %v500_v1 = vpop.permute.xlu0 %499 }
 0x1ab   : > { %468 = vst.msk [vmem:[%s1099_s18 + $0x48] sm:$0xff] %vm202_vm1, %v460_v0  ;;  %v521_v2 = vsel %vm334_vm3, %v481_v63, %v500_v1 }
 0x1ac   : > { %666 = vst.msk [vmem:[%s1099_s18 + $0x30] sm:$0xff] %vm202_vm1, %v521_v2 }
 0x1ad   : > { %v446_v4 = vpop.permute.xlu1 %445 }
 0x1ae   : > { %v462_v6 = vsel %vm334_vm3, %v414_v3, %v446_v4  ;;  %v440_v56 = vpop.permute.xlu0 %439 }
 0x1af   : > { %470 = vst.msk [vmem:[%s1099_s18 + $0x68] sm:$0xff] %vm202_vm1, %v462_v6  ;;  %v459_v7 = vsel %vm334_vm3, %v411_v5, %v440_v56 }
 0x1b0   : > { %467 = vst.msk [vmem:[%s1099_s18 + $0x40] sm:$0xff] %vm202_vm1, %v459_v7 }
 0x1b1   : > { %v436_v9 = vpop.permute.xlu1 %435 }
 0x1b2   : > { %v457_v11 = vsel %vm334_vm3, %v409_v8, %v436_v9  ;;  %v444_v12 = vpop.permute.xlu0 %443 }
 0x1b3   : > { %465 = vst.msk [vmem:[%s1099_s18 + $0x20] sm:$0xff] %vm202_vm1, %v457_v11  ;;  %v461_v13 = vsel %vm334_vm3, %v413_v10, %v444_v12 }
 0x1b4   : > { %469 = vst.msk [vmem:[%s1099_s18 + $0x60] sm:$0xff] %vm202_vm1, %v461_v13 }
 0x1b5   : > { %v510_v15 = vpop.permute.xlu1 %509 }
 0x1b6   : > { %v526_v18 = vsel %vm334_vm3, %v486_v14, %v510_v15  ;;  %v508_v19 = vpop.permute.xlu0 %507 }
 0x1b7   : > { %671 = vst.msk [vmem:[%s1099_s18 + $0x78] sm:$0xff] %vm202_vm1, %v526_v18  ;;  %v525_v20 = vsel %vm334_vm3, %v485_v17, %v508_v19 }
 0x1b8   : > { %670 = vst.msk [vmem:[%s1099_s18 + $0x70] sm:$0xff] %vm202_vm1, %v525_v20 }
 0x1b9   : > { %852 = shalt.err (!%p849_p5)
}
 0x1ba   : > { %s853_s18 = scalar_lea.hbm %s1291_s27, 2048  ;;  %s857_s5 = scalar_lea.hbm %s1352_s2, 16384 }
 0x1bb   : > { %p854_p6 = scmp.ne.s32.totalorder %s1291_s27, %s853_s18  ;;  %p858_p4 = scmp.lt.u32.totalorder %s1291_s27, %s1352_s2 }
 0x1bc   : > { %p859_p10 = scmp.lt.u32.totalorder %s857_s5, %s853_s18  ;;  %p861_p8 = scmp.lt.u32.totalorder %s853_s18, %s1291_s27 }
 0x1bd   : > { %p855_p7 = pnand %p854_p6, %p1359_p12 }
 0x1be   : > { %p860_p9 = por %p859_p10, %p858_p4 }
 0x1bf   : > { %p856_p2 = pneg %p855_p7 }
 0x1c0   : > { %p862_p0 = por %p861_p8, %p860_p9 }
 0x1c2   : > { %p863_p11 = pnand %p862_p0, %p856_p2 }
 0x1c4   : > { %866 = shalt.err (!%p863_p11)
}
 0x1c5   : > { %s945_s13 = smov 128   ;;  %s946_s7 = smov 8  }
 0x1c6   : > { %727 = dma.vmem_to_hbm [thread:$0]  (%p1359_p12), %s1285_s12, 2048, %s1291_s27, %s537_s24, %s945_s13, %s945_s13, %s946_s7  }
 0x1c7 PF: > { %p738_p13 = scmp.ge.s32.totalorder %s937_s16, 2  ;;  %s568_s21 = sand.u32 1, %s909_s9  }
 0x1c8   : > { %p1360_p1 = scmp.ne.s32.totalorder %s1357_s28, 0  ;;  %s569_s29 = scalar_lea.sflag [#allocation5], %s568_s21 }
 0x1ca   : > { %p734_p3 = pnand %p738_p13, %p1360_p1 }
 0x1cc   : > { %904 = dma.done.wait (!%p734_p3), %s569_s29, 2048  }
 0x1cd   : > { %906 = vsyncadd (!%p734_p3), %s569_s29, 4294965248  ;;  %s18_s16 = sadd.s32 1, %s937_s16   ;;  %s1361_s9 = smov %s913_s10 }
 0x1ce   : > { %p15_p5 = scmp.ge.s32.totalorder %s18_s16, 10   ;;  %s1362_s10 = smov %s917_s11 }
 0x1cf   : > { %s1363_s11 = smov %s1040_s30  ;;  %s1364_s12 = smov %s929_s14 }
 0x1d0   : > { %s1365_s13 = smov %s933_s15  ;;  %s1366_s14 = smov %s1369_s19 }
 0x1d1   : > { %s1367_s15 = smov %s1373_s20  ;;  %17 = sbr.rel (!%p15_p5) target bundleno = 7 (0x7), region = 78 }
 0x1d8   :  { %574 = vsyncpa [#allocation4], 1 }
 0x1d9   :  { %576 = vsyncpa [#allocation4 + $0x1], 1 }
 0x1da   :  { %577 = vsyncpa [#allocation5], 1 }
 0x1db   :  { %579 = vsyncpa [#allocation5 + $0x1], 1 }

</bundles_post_ra>
